<compile_context>
chip_gen: v6e
topology: v6e:2x2x1
jax: 0.10.0
libtpu: 0.0.40
codegen_flags: <defaults>
</compile_context>

<pallas_src>
import jax
import jax.numpy as jnp
from jax import lax
from jax.experimental import pallas as pl
from jax.experimental.pallas import tpu as pltpu


def metanet_kernel(emb_ref, pen_ref, w1_ref, b1_ref, w2_ref,
                   w3_ref, b3_ref, w4_ref, b4_ref, o_ref):
    # emb_ref: [TB, S, D] bf16      pen_ref: [TB, S] f32 (mask * 1e8)
    # w1: [D, D] bf16  b1: [1, D] f32   w2: [D, 1] bf16
    # w3: [D, M] bf16  b3: [1, M] f32   w4: [M, D*D] bf16  b4: [1, D*D] f32
    # o_ref: [TB, D*D] (bf16 by default)
    TB, S, D = emb_ref.shape
    f32 = jnp.float32
    bf16 = jnp.bfloat16
    # weights are pre-transposed to [in, out] -> contract act dim 1 x weight dim 0
    dn = (((1,), (0,)), ((), ()))

    emb3 = emb_ref[...]                            # [TB, S, D] bf16
    emb2 = emb3.reshape(TB * S, D)                 # merge leading dims only

    # --- event_K: Linear(D, D) + ReLU (f32 accumulation on the MXU) --------
    h1 = lax.dot_general(emb2, w1_ref[...], dn, preferred_element_type=f32)
    h1 = jnp.maximum(h1 + b1_ref[...], 0.0)        # [TB*S, D] f32

    # --- event_K: Linear(D, 1, bias=False) as a (free) MXU matmul ----------
    score = lax.dot_general(h1.astype(bf16), w2_ref[...], dn,
                            preferred_element_type=f32)        # [TB*S, 1]
    score3 = score.reshape(TB, S, 1)               # leading split, free

    # --- mask + softmax over the sequence (sublane) axis --------------------
    pen3 = pen_ref[...][:, :, None]                # [TB, S, 1] (tiny relayout)
    t = score3 - pen3
    t = t - jnp.max(t, axis=1, keepdims=True)
    e = jnp.exp(t)
    att = e / jnp.sum(e, axis=1, keepdims=True)    # [TB, S, 1] f32

    # --- attention-weighted history feature (f32 VPU; v5e-safe) -------------
    his = jnp.sum(att * emb3.astype(f32), axis=1)  # [TB, D] f32

    # --- decoder: Linear(D, M) + ReLU, Linear(M, D*D) ------------------------
    h2 = lax.dot_general(his.astype(bf16), w3_ref[...], dn,
                         preferred_element_type=f32)
    h2 = jnp.maximum(h2 + b3_ref[...], 0.0)        # [TB, M] f32
    out = lax.dot_general(h2.astype(bf16), w4_ref[...], dn,
                          preferred_element_type=f32)
    out = out + b4_ref[...]                        # [TB, D*D] f32, lane-dense

    o_ref[...] = out.astype(o_ref.dtype)


def metanet_forward(emb_fea, seq_index, w1, b1, w2, w3, b3, w4, b4,
                    *, batch_tile=None, out_dtype=jnp.bfloat16):
    """emb_fea: f32 [B, S, D]; seq_index: int [B, S]; returns [B, D*D]."""
    B, S, D = emb_fea.shape
    M = w3.shape[0]
    DD = w4.shape[0]
    f32, bf16 = jnp.float32, jnp.bfloat16

    # v7x: keep tb <= 512 and B//tb even; v6e: 1024-2048 is fine; v5e: <=512.
    tb = batch_tile if batch_tile is not None else min(B, 512)
    grid = (pl.cdiv(B, tb),)

    # Wrapper-side glue (one-time XLA ops, outside the grid loop):
    #  * bf16 inputs/weights (f32 accumulation kept inside the kernel)
    #  * weights pre-transposed to [in, out] so the MXU is fed K-major
    #  * mask penalty precomputed as lane-dense f32 [B, S]
    emb_b = emb_fea.astype(bf16)
    pen = (seq_index == 0).astype(f32) * jnp.float32(1e8)       # [B, S]
    w1t = jnp.transpose(w1).astype(bf16)                        # [D, D]
    w2t = jnp.transpose(w2).astype(bf16)                        # [D, 1]
    w3t = jnp.transpose(w3).astype(bf16)                        # [D, M]
    w4t = jnp.transpose(w4).astype(bf16)                        # [M, DD]
    b1r = b1.reshape(1, D).astype(f32)
    b3r = b3.reshape(1, M).astype(f32)
    b4r = b4.reshape(1, DD).astype(f32)

    # Advisory cost hint (mem-bound custom call).
    flops = B * (2 * S * D * D + 2 * S * D + 2 * S * D + 2 * D * M + 2 * M * DD)
    bytes_accessed = (emb_b.size * 2 + pen.size * 4 + B * DD * jnp.dtype(out_dtype).itemsize
                      + (w1t.size + w2t.size + w3t.size + w4t.size) * 2
                      + (b1r.size + b3r.size + b4r.size) * 4)
    cost = pl.CostEstimate(flops=int(flops), transcendentals=int(B * S),
                           bytes_accessed=int(bytes_accessed))

    out = pl.pallas_call(
        metanet_kernel,
        out_shape=jax.ShapeDtypeStruct((B, DD), out_dtype),
        grid_spec=pltpu.PrefetchScalarGridSpec(
            num_scalar_prefetch=0,
            grid=grid,
            in_specs=[
                pl.BlockSpec((tb, S, D), lambda b: (b, 0, 0)),   # emb tile (bf16)
                pl.BlockSpec((tb, S), lambda b: (b, 0)),         # mask penalty tile
                # weights/biases: constant index_map -> VMEM-resident across tiles
                pl.BlockSpec((D, D), lambda b: (0, 0)),          # w1^T
                pl.BlockSpec((1, D), lambda b: (0, 0)),          # b1
                pl.BlockSpec((D, 1), lambda b: (0, 0)),          # w2^T
                pl.BlockSpec((D, M), lambda b: (0, 0)),          # w3^T
                pl.BlockSpec((1, M), lambda b: (0, 0)),          # b3
                pl.BlockSpec((M, DD), lambda b: (0, 0)),         # w4^T
                pl.BlockSpec((1, DD), lambda b: (0, 0)),         # b4
            ],
            out_specs=pl.BlockSpec((tb, DD), lambda b: (b, 0)),
        ),
        compiler_params=pltpu.CompilerParams(
            dimension_semantics=("parallel",),        # shard batch tiles across TCs
            vmem_limit_bytes=32 * 1024 * 1024,        # safe on v5e/v6e/v7x
        ),
        cost_estimate=cost,
    )(emb_b, pen, w1t, b1r, w2t, w3t, b3r, w4t, b4r)
    return out


def metanet_reference(emb_fea, seq_index, w1, b1, w2, w3, b3, w4, b4):
    """Pure-JAX f32 reference matching the PyTorch module."""
    hp = lax.Precision.HIGHEST
    mask = (seq_index == 0).astype(jnp.float32)                       # [B, S]
    h1 = jax.nn.relu(jnp.einsum("bsd,ed->bse", emb_fea, w1, precision=hp) + b1)
    event_k = jnp.einsum("bse,oe->bso", h1, w2, precision=hp)         # [B, S, 1]
    t = event_k - mask[:, :, None] * 1e8
    att = jax.nn.softmax(t, axis=1)
    his = jnp.sum(att * emb_fea, axis=1)                              # [B, D]
    h2 = jax.nn.relu(jnp.einsum("bd,md->bm", his, w3, precision=hp) + b3)
    out = jnp.einsum("bm,om->bo", h2, w4, precision=hp) + b4          # [B, D*D]
    return out


if __name__ == "__main__":
    emb_dim, meta_dim = 32, 16
    B, S = 16, 8

    key = jax.random.PRNGKey(0)
    ks = jax.random.split(key, 9)

    emb_fea = jax.random.normal(ks[0], (B, S, emb_dim), dtype=jnp.float32) * 0.1
    # some zeros so the padding-mask path is exercised
    seq_index = jax.random.randint(ks[1], (B, S), 0, 5, dtype=jnp.int32)

    w1 = jax.random.normal(ks[2], (emb_dim, emb_dim), dtype=jnp.float32) * 0.1
    b1 = jax.random.normal(ks[3], (emb_dim,), dtype=jnp.float32) * 0.1
    w2 = jax.random.normal(ks[4], (1, emb_dim), dtype=jnp.float32) * 0.1
    w3 = jax.random.normal(ks[5], (meta_dim, emb_dim), dtype=jnp.float32) * 0.1
    b3 = jax.random.normal(ks[6], (meta_dim,), dtype=jnp.float32) * 0.1
    w4 = jax.random.normal(ks[7], (emb_dim * emb_dim, meta_dim), dtype=jnp.float32) * 0.1
    b4 = jax.random.normal(ks[8], (emb_dim * emb_dim,), dtype=jnp.float32) * 0.1

    out = metanet_forward(emb_fea, seq_index, w1, b1, w2, w3, b3, w4, b4,
                          batch_tile=8)   # grid=(2,) -> exercises pipelining
    out = jax.block_until_ready(out)

    ref = metanet_reference(emb_fea, seq_index, w1, b1, w2, w3, b3, w4, b4)

    assert out.shape == (B, emb_dim * emb_dim), out.shape
    out_f32 = out.astype(jnp.float32)
    max_err = float(jnp.max(jnp.abs(out_f32 - ref)))
    # bf16 inputs/weights/output -> relaxed tolerance vs. the f32 reference
    assert jnp.allclose(out_f32, ref, atol=2e-2, rtol=2e-2), max_err
    print("KERNEL_OK")
</pallas_src>

<mosaic_0001>
module attributes {stable_mosaic.version = 11 : i64} {
  func.func @metanet_kernel(%arg0: i32, %arg1: memref<8x8x32xbf16, #tpu.memory_space<vmem>>, %arg2: memref<8x8xf32, #tpu.memory_space<vmem>>, %arg3: memref<32x32xbf16, #tpu.memory_space<vmem>>, %arg4: memref<1x32xf32, #tpu.memory_space<vmem>>, %arg5: memref<32x1xbf16, #tpu.memory_space<vmem>>, %arg6: memref<32x16xbf16, #tpu.memory_space<vmem>>, %arg7: memref<1x16xf32, #tpu.memory_space<vmem>>, %arg8: memref<16x1024xbf16, #tpu.memory_space<vmem>>, %arg9: memref<1x1024xf32, #tpu.memory_space<vmem>>, %arg10: memref<8x1024xbf16, #tpu.memory_space<vmem>>) attributes {dimension_semantics = [#tpu.dimension_semantics<parallel>], iteration_bounds = array<i64: 2>, scalar_prefetch = 0 : i64, scratch_operands = 0 : i64, tpu.core_type = #tpu.core_type<tc>, window_params = [{transform_indices = @transform_0, window_bounds = array<i64: 8, 8, 32>}, {transform_indices = @transform_1, window_bounds = array<i64: 8, 8>}, {pipeline_mode = #tpu.pipeline_mode<synchronous>, transform_indices = @transform_2, window_bounds = array<i64: 32, 32>}, {pipeline_mode = #tpu.pipeline_mode<synchronous>, transform_indices = @transform_3, window_bounds = array<i64: 1, 32>}, {pipeline_mode = #tpu.pipeline_mode<synchronous>, transform_indices = @transform_4, window_bounds = array<i64: 32, 1>}, {pipeline_mode = #tpu.pipeline_mode<synchronous>, transform_indices = @transform_5, window_bounds = array<i64: 32, 16>}, {pipeline_mode = #tpu.pipeline_mode<synchronous>, transform_indices = @transform_6, window_bounds = array<i64: 1, 16>}, {pipeline_mode = #tpu.pipeline_mode<synchronous>, transform_indices = @transform_7, window_bounds = array<i64: 16, 1024>}, {pipeline_mode = #tpu.pipeline_mode<synchronous>, transform_indices = @transform_8, window_bounds = array<i64: 1, 1024>}, {transform_indices = @transform_9, window_bounds = array<i64: 8, 1024>}]} {
    %c0 = arith.constant 0 : index
    %c0_0 = arith.constant 0 : index
    %c0_1 = arith.constant 0 : index
    %0 = vector.load %arg1[%c0, %c0_0, %c0_1] : memref<8x8x32xbf16, #tpu.memory_space<vmem>>, vector<8x8x32xbf16>
    %1 = vector.shape_cast %0 : vector<8x8x32xbf16> to vector<64x32xbf16>
    %c0_2 = arith.constant 0 : index
    %c0_3 = arith.constant 0 : index
    %2 = vector.load %arg3[%c0_2, %c0_3] : memref<32x32xbf16, #tpu.memory_space<vmem>>, vector<32x32xbf16>
    %cst = arith.constant dense<0.000000e+00> : vector<64x32xf32>
    %3 = tpu.matmul %1, %2, %cst {dimension_numbers = #tpu.dot_dimension_numbers<[1], [0], [0], [1], [0, 0, 1, 1], [], []>} : vector<64x32xbf16>, vector<32x32xbf16>, vector<64x32xf32> -> vector<64x32xf32>
    %c0_4 = arith.constant 0 : index
    %c0_5 = arith.constant 0 : index
    %4 = vector.load %arg4[%c0_4, %c0_5] : memref<1x32xf32, #tpu.memory_space<vmem>>, vector<1x32xf32>
    %5 = vector.broadcast %4 : vector<1x32xf32> to vector<64x32xf32>
    %6 = arith.addf %3, %5 : vector<64x32xf32>
    %cst_6 = arith.constant 0.000000e+00 : f32
    %7 = vector.broadcast %cst_6 : f32 to vector<64x32xf32>
    %8 = arith.maximumf %6, %7 : vector<64x32xf32>
    %9 = arith.truncf %8 : vector<64x32xf32> to vector<64x32xbf16>
    %c0_7 = arith.constant 0 : index
    %c0_8 = arith.constant 0 : index
    %10 = vector.load %arg5[%c0_7, %c0_8] : memref<32x1xbf16, #tpu.memory_space<vmem>>, vector<32x1xbf16>
    %cst_9 = arith.constant dense<0.000000e+00> : vector<64x1xf32>
    %11 = tpu.matmul %9, %10, %cst_9 {dimension_numbers = #tpu.dot_dimension_numbers<[1], [0], [0], [1], [0, 0, 1, 1], [], []>} : vector<64x32xbf16>, vector<32x1xbf16>, vector<64x1xf32> -> vector<64x1xf32>
    %12 = vector.shape_cast %11 : vector<64x1xf32> to vector<8x8x1xf32>
    %c0_10 = arith.constant 0 : index
    %c0_11 = arith.constant 0 : index
    %13 = vector.load %arg2[%c0_10, %c0_11] : memref<8x8xf32, #tpu.memory_space<vmem>>, vector<8x8xf32>
    %14 = vector.shape_cast %13 : vector<8x8xf32> to vector<8x8x1xf32>
    %15 = arith.subf %12, %14 : vector<8x8x1xf32>
    %cst_12 = arith.constant dense<0xFF800000> : vector<8x1xf32>
    %16 = vector.multi_reduction <maximumf>, %15, %cst_12 [1] : vector<8x8x1xf32> to vector<8x1xf32>
    %17 = vector.shape_cast %16 : vector<8x1xf32> to vector<8x1x1xf32>
    %18 = vector.broadcast %17 : vector<8x1x1xf32> to vector<8x8x1xf32>
    %19 = arith.subf %15, %18 : vector<8x8x1xf32>
    %20 = math.exp %19 : vector<8x8x1xf32>
    %cst_13 = arith.constant dense<0.000000e+00> : vector<8x1xf32>
    %21 = vector.multi_reduction <add>, %20, %cst_13 [1] : vector<8x8x1xf32> to vector<8x1xf32>
    %22 = vector.shape_cast %21 : vector<8x1xf32> to vector<8x1x1xf32>
    %23 = vector.broadcast %22 : vector<8x1x1xf32> to vector<8x8x1xf32>
    %24 = arith.divf %20, %23 : vector<8x8x1xf32>
    %25 = arith.extf %0 : vector<8x8x32xbf16> to vector<8x8x32xf32>
    %26 = vector.broadcast %24 : vector<8x8x1xf32> to vector<8x8x32xf32>
    %27 = arith.mulf %26, %25 : vector<8x8x32xf32>
    %cst_14 = arith.constant dense<0.000000e+00> : vector<8x32xf32>
    %28 = vector.multi_reduction <add>, %27, %cst_14 [1] : vector<8x8x32xf32> to vector<8x32xf32>
    %29 = arith.truncf %28 : vector<8x32xf32> to vector<8x32xbf16>
    %c0_15 = arith.constant 0 : index
    %c0_16 = arith.constant 0 : index
    %30 = vector.load %arg6[%c0_15, %c0_16] : memref<32x16xbf16, #tpu.memory_space<vmem>>, vector<32x16xbf16>
    %cst_17 = arith.constant dense<0.000000e+00> : vector<8x16xf32>
    %31 = tpu.matmul %29, %30, %cst_17 {dimension_numbers = #tpu.dot_dimension_numbers<[1], [0], [0], [1], [0, 0, 1, 1], [], []>} : vector<8x32xbf16>, vector<32x16xbf16>, vector<8x16xf32> -> vector<8x16xf32>
    %c0_18 = arith.constant 0 : index
    %c0_19 = arith.constant 0 : index
    %32 = vector.load %arg7[%c0_18, %c0_19] : memref<1x16xf32, #tpu.memory_space<vmem>>, vector<1x16xf32>
    %33 = vector.broadcast %32 : vector<1x16xf32> to vector<8x16xf32>
    %34 = arith.addf %31, %33 : vector<8x16xf32>
    %cst_20 = arith.constant 0.000000e+00 : f32
    %35 = vector.broadcast %cst_20 : f32 to vector<8x16xf32>
    %36 = arith.maximumf %34, %35 : vector<8x16xf32>
    %37 = arith.truncf %36 : vector<8x16xf32> to vector<8x16xbf16>
    %c0_21 = arith.constant 0 : index
    %c0_22 = arith.constant 0 : index
    %38 = vector.load %arg8[%c0_21, %c0_22] : memref<16x1024xbf16, #tpu.memory_space<vmem>>, vector<16x1024xbf16>
    %cst_23 = arith.constant dense<0.000000e+00> : vector<8x1024xf32>
    %39 = tpu.matmul %37, %38, %cst_23 {dimension_numbers = #tpu.dot_dimension_numbers<[1], [0], [0], [1], [0, 0, 1, 1], [], []>} : vector<8x16xbf16>, vector<16x1024xbf16>, vector<8x1024xf32> -> vector<8x1024xf32>
    %c0_24 = arith.constant 0 : index
    %c0_25 = arith.constant 0 : index
    %40 = vector.load %arg9[%c0_24, %c0_25] : memref<1x1024xf32, #tpu.memory_space<vmem>>, vector<1x1024xf32>
    %41 = vector.broadcast %40 : vector<1x1024xf32> to vector<8x1024xf32>
    %42 = arith.addf %39, %41 : vector<8x1024xf32>
    %43 = arith.truncf %42 : vector<8x1024xf32> to vector<8x1024xbf16>
    %c0_26 = arith.constant 0 : index
    %c0_27 = arith.constant 0 : index
    %44 = vector.load %arg10[%c0_26, %c0_27] : memref<8x1024xbf16, #tpu.memory_space<vmem>>, vector<8x1024xbf16>
    tpu.vector_store %arg10[%c0_26, %c0_27], %43 {strides = array<i32>} : memref<8x1024xbf16, #tpu.memory_space<vmem>>, vector<8x1024xbf16>,
    return
  }
  func.func @transform_0(%arg0: i32) -> (i32, i32, i32) {
    %c0_i32 = arith.constant 0 : i32
    %c0_i32_0 = arith.constant 0 : i32
    %c0_i32_1 = arith.constant 0 : i32
    return %arg0, %c0_i32, %c0_i32_0 : i32, i32, i32
  }
  func.func @transform_1(%arg0: i32) -> (i32, i32) {
    %c0_i32 = arith.constant 0 : i32
    %c0_i32_0 = arith.constant 0 : i32
    return %arg0, %c0_i32 : i32, i32
  }
  func.func @transform_2(%arg0: i32) -> (i32, i32) {
    %c0_i32 = arith.constant 0 : i32
    %c0_i32_0 = arith.constant 0 : i32
    %c0_i32_1 = arith.constant 0 : i32
    return %c0_i32, %c0_i32_0 : i32, i32
  }
  func.func @transform_3(%arg0: i32) -> (i32, i32) {
    %c0_i32 = arith.constant 0 : i32
    %c0_i32_0 = arith.constant 0 : i32
    %c0_i32_1 = arith.constant 0 : i32
    return %c0_i32, %c0_i32_0 : i32, i32
  }
  func.func @transform_4(%arg0: i32) -> (i32, i32) {
    %c0_i32 = arith.constant 0 : i32
    %c0_i32_0 = arith.constant 0 : i32
    %c0_i32_1 = arith.constant 0 : i32
    return %c0_i32, %c0_i32_0 : i32, i32
  }
  func.func @transform_5(%arg0: i32) -> (i32, i32) {
    %c0_i32 = arith.constant 0 : i32
    %c0_i32_0 = arith.constant 0 : i32
    %c0_i32_1 = arith.constant 0 : i32
    return %c0_i32, %c0_i32_0 : i32, i32
  }
  func.func @transform_6(%arg0: i32) -> (i32, i32) {
    %c0_i32 = arith.constant 0 : i32
    %c0_i32_0 = arith.constant 0 : i32
    %c0_i32_1 = arith.constant 0 : i32
    return %c0_i32, %c0_i32_0 : i32, i32
  }
  func.func @transform_7(%arg0: i32) -> (i32, i32) {
    %c0_i32 = arith.constant 0 : i32
    %c0_i32_0 = arith.constant 0 : i32
    %c0_i32_1 = arith.constant 0 : i32
    return %c0_i32, %c0_i32_0 : i32, i32
  }
  func.func @transform_8(%arg0: i32) -> (i32, i32) {
    %c0_i32 = arith.constant 0 : i32
    %c0_i32_0 = arith.constant 0 : i32
    %c0_i32_1 = arith.constant 0 : i32
    return %c0_i32, %c0_i32_0 : i32, i32
  }
  func.func @transform_9(%arg0: i32) -> (i32, i32) {
    %c0_i32 = arith.constant 0 : i32
    %c0_i32_0 = arith.constant 0 : i32
    return %arg0, %c0_i32 : i32, i32
  }
}

</mosaic_0001>

<bundles_post_ra>
// kernel: tpu_custom_call.1
= control target key start
LH: loop header
LB: loop body
LE: loop exit
PB: predicated region body
PF: predicated region fallthrough
CT: control target
= control target key end

     0   :  { %14 = vsyncpa [#allocation3], 0  ;;  %s2322_s0 = inlined_call_operand.vmem [shape: bf16[16,8,32], index: 0, kind: input, shape index: {}]   ;;  %s2323_s1 = inlined_call_operand.vmem [shape: f32[16,8], index: 1, kind: input, shape index: {}]   ;;  %s2324_s2 = inlined_call_operand.hbm [shape: bf16[32,32], index: 2, kind: input, shape index: {}]   ;;  %s2325_s3 = inlined_call_operand.hbm [shape: f32[1,32], index: 3, kind: input, shape index: {}]   ;;  %s2326_s4 = inlined_call_operand.vmem [shape: bf16[32,1], index: 4, kind: input, shape index: {}]   ;;  %s2327_s5 = inlined_call_operand.vmem [shape: bf16[32,16], index: 5, kind: input, shape index: {}]   ;;  %s2328_s6 = inlined_call_operand.vmem [shape: f32[1,16], index: 6, kind: input, shape index: {}]   ;;  %s2329_s7 = inlined_call_operand.hbm [shape: bf16[16,1024], index: 7, kind: input, shape index: {}]   ;;  %s2330_s8 = inlined_call_operand.hbm [shape: f32[1,1024], index: 8, kind: input, shape index: {}]   ;;  %s2331_s9 = inlined_call_operand.hbm [shape: bf16[16,1024], index: 9, kind: output, shape index: {}]  }
   0x1   :  { %15 = vsyncpa [#allocation6], 0 }
   0x2   :  { %16 = vsyncpa [#allocation9], 0 }
   0x3   :  { %17 = vsyncpa [#allocation4], 0 }
   0x4   :  { %19 = vsyncpa [#allocation4 + $0x1], 0  ;;  %s1983_s30 = smov 0   ;;  %s1985_s10 = smov 0  }
   0x5   :  { %s1987_s11 = smov 0   ;;  %s1989_s12 = smov 0  }
   0x6 LB: > { %s2004_s13 = sadd.s32 4294967295, %s1919_s12   ;;  %s1498_s14 = sadd.s32 4294967294, %s1919_s12   ;;  %s1919_s12 = sphi %s1989_s12, %s2339_s12   ;;  %s1915_s11 = sphi %s1987_s11, %s2338_s11   ;;  %s1911_s10 = sphi %s1985_s10, %s2337_s10   ;;  %s1907_s30 = sphi %s1983_s30, %s2336_s30  }
   0x7   : > { %s2008_s15 = sadd.s32 1, %s1919_s12   ;;  %s231_s16 = sadd.s32 1, %s1915_s11 }
   0x8   : > { %s228_s17 = ssub.s32 %s1919_s12, %s2008_s15  ;;  %p241_p0 = scmp.ne.s32.totalorder %s1915_s11, %s1911_s10 }
   0x9   : > { %p229_p1 = scmp.eq.s32.totalorder %s228_s17, 0  ;;  %p242_p2 = scmp.eq.s32.totalorder %s2004_s13, 1 }
   0xa   : > { %p247_p3 = scmp.ne.s32.totalorder %s1911_s10, %s1907_s30  ;;  %p248_p4 = scmp.eq.s32.totalorder %s1498_s14, 1 }
   0xb   : > { %s2019_s18 = scalar_select %p229_p1, %s1915_s11, %s231_s16  }
   0xc   : > { %p2021_p5 = por %p242_p2, %p241_p0  ;;  %p2025_p6 = por %p248_p4, %p247_p3 }
   0xd   : > { %p1499_p7 = scmp.ge.s32.totalorder %s1919_s12, 1  ;;  %p255_p8 = scmp.lt.s32.totalorder %s1919_s12, 3 }
   0xe   : > { %p1643_p9 = scmp.eq.s32.totalorder %s2004_s13, 0  ;;  %s1921_s22 = smov [#allocation5]  }
   0xf   : > { %p2032_p10 = pnand %p1499_p7, %p255_p8  ;;  %s281_s23 = sshll.u32 %s1921_s22, 4  ;;  %s282_s23 = int_to_ptr.vmem [resolvable:$true] %s281_s23 }
  0x10   : > { %s1922_s24 = smov [#allocation2]   ;;  %s1923_s27 = smov [#allocation7]  }
  0x11   : > { %p1626_p11 = pneg %p2032_p10  ;;  %s267_s25 = sshll.u32 %s1922_s24, 4  ;;  %s2044_s25 = int_to_ptr.vmem [resolvable:$true] %s267_s25 }
  0x12   : > { %s300_s28 = sshll.u32 %s1923_s27, 4  ;;  %s1754_s29 = scalar_lea.vmem %s282_s23, 16  ;;  %s301_s28 = int_to_ptr.vmem [resolvable:$true] %s300_s28 }
  0x13   : > { %p2040_p12 = pnand %p1643_p9, %p1626_p11  ;;  %p1755_p0 = scmp.ne.s32.totalorder %s282_s23, %s1754_s29 }
  0x14   : > { %s1761_s14 = scalar_lea.vmem %s282_s23, 32  ;;  %p1762_p3 = scmp.lt.s32.totalorder %s282_s23, %s282_s23 }
  0x15   : > { %p1745_p13 = pneg %p2040_p12  ;;  %p1763_p4 = scmp.lt.s32.totalorder %s1761_s14, %s1754_s29 }
  0x17   : > { %p1757_p1 = pnand %p1755_p0, %p1745_p13  ;;  %p1764_p7 = por %p1763_p4, %p1762_p3 }
  0x19   : > { %p1758_p2 = pneg %p1757_p1 }
  0x1b   : > { %p1765_p8 = pnand %p1764_p7, %p1758_p2 }
  0x1d   : > { %1768 = shalt.err (!%p1765_p8)
}
  0x1e   : > { %1632 = dma.hbm_to_vmem [thread:$0]  (!%p2040_p12), %s2325_s3, 16, %s282_s23, [#allocation6]  }
  0x1f   : > { %s1780_s22 = scalar_lea.vmem %s2044_s25, 256  ;;  %p1788_p3 = scmp.lt.s32.totalorder %s2044_s25, %s2044_s25 }
  0x20   : > { %p1781_p11 = scmp.ne.s32.totalorder %s2044_s25, %s1780_s22  ;;  %p1789_p2 = scmp.lt.s32.totalorder %s1780_s22, %s1780_s22 }
  0x22   : > { %p1783_p0 = pnand %p1781_p11, %p1745_p13  ;;  %p1790_p4 = por %p1789_p2, %p1788_p3 }
  0x24   : > { %p1784_p1 = pneg %p1783_p0 }
  0x26   : > { %p1791_p7 = pnand %p1790_p4, %p1784_p1 }
  0x28   : > { %1794 = shalt.err (!%p1791_p7)
}
  0x29   : > { %s1924_s24 = smov 64   ;;  %s1925_s27 = smov 4  }
  0x2a   : > { %1629 = dma.hbm_to_vmem [thread:$0]  (!%p2040_p12), %s2324_s2, 256, %s2044_s25, [#allocation3], %s1924_s24, %s1924_s24, %s1925_s27  }
  0x2b   : > { %s1806_s14 = scalar_lea.vmem %s301_s28, 1024  ;;  %p1814_p3 = scmp.lt.s32.totalorder %s301_s28, %s301_s28 }
  0x2c   : > { %p1807_p8 = scmp.ne.s32.totalorder %s301_s28, %s1806_s14  ;;  %p1815_p1 = scmp.lt.s32.totalorder %s1806_s14, %s1806_s14 }
  0x2e   : > { %p1809_p11 = pnand %p1807_p8, %p1745_p13  ;;  %p1816_p2 = por %p1815_p1, %p1814_p3 }
  0x30   : > { %p1810_p0 = pneg %p1809_p11 }
  0x32   : > { %p1817_p4 = pnand %p1816_p2, %p1810_p0 }
  0x34   : > { %1820 = shalt.err (!%p1817_p4)
}
  0x35   : > { %s1926_s16 = smov 512   ;;  %s1927_s17 = smov 32  }
  0x36   : > { %1635 = dma.hbm_to_vmem [thread:$0]  (!%p2040_p12), %s2329_s7, 1024, %s301_s28, [#allocation6], %s1926_s16, %s1926_s16, %s1927_s17  }
  0x37   : > { %s1928_s25 = smov [#allocation8]  }
  0x38   : > { %s314_s24 = sshll.u32 %s1928_s25, 4  ;;  %s315_s24 = int_to_ptr.vmem [resolvable:$true] %s314_s24 }
  0x39   : > { %s1832_s27 = scalar_lea.vmem %s315_s24, 128  ;;  %p1840_p0 = scmp.lt.s32.totalorder %s315_s24, %s315_s24 }
  0x3a   : > { %p1833_p7 = scmp.ne.s32.totalorder %s315_s24, %s1832_s27  ;;  %p1841_p3 = scmp.lt.s32.totalorder %s1832_s27, %s1832_s27 }
  0x3c   : > { %p1835_p8 = pnand %p1833_p7, %p1745_p13  ;;  %p1842_p1 = por %p1841_p3, %p1840_p0 }
  0x3e   : > { %p1836_p11 = pneg %p1835_p8 }
  0x40   : > { %p1843_p2 = pnand %p1842_p1, %p1836_p11 }
  0x42   : > { %1846 = shalt.err (!%p1843_p2)
}
  0x43   : > { %1638 = dma.hbm_to_vmem [thread:$0]  (!%p2040_p12), %s2330_s8, 128, %s315_s24, [#allocation9]  }
  0x44   : > { %343 = sbr.rel (%p2032_p10) target bundleno = 1132 (0x46c), region = 56 }
  0x49   : > { %1890 = dma.done.wait (%p1643_p9), [#allocation3], 256  }
  0x4a   : > { %1892 = vsyncadd (%p1643_p9), [#allocation3], 4294967040 }
  0x4b   : > { %1894 = dma.done.wait (%p1643_p9), [#allocation6], 1040  }
  0x4c   : > { %1896 = vsyncadd (%p1643_p9), [#allocation6], 4294966256 }
  0x4d   : > { %1898 = dma.done.wait (%p1643_p9), [#allocation9], 128  }
  0x4e   : > { %1900 = vsyncadd (%p1643_p9), [#allocation9], 4294967168  ;;  %s1511_s21 = sshll.u32 %s2004_s13, 3  ;;  %v1697_v0 = vld [vmem:[#allocation2 + $0x8] sm:$0xff]   ;;  %v1698_v1 = vld [vmem:[#allocation2] sm:$0xff]   ;;  %vm457_vm0 = vcmask 261120   ;;  %v641_v8 = vlaneseq }
  0x4f   : > { %p396_p10 = scmp.lt.s32.totalorder %s1511_s21, 15  ;;  %1576 = vmatprep.subr.bf16.mxu0 %v1697_v0  ;;  %v1703_v6 = vld [vmem:[%s2326_s4 + $0x8] sm:$0xff]   ;;  %v1704_v7 = vld [vmem:[%s2326_s4] sm:$0xff]   ;;  %p401_p9 = scmp.lt.s32.totalorder %s2004_s13, 1  ;;  %v1514_v29 = vld [vmem:[#allocation5] ss:$0 sm:$0xff] }
  0x50   : > { %1577 = vmatpush3.bf16.msra.mxu0 %v1697_v0  ;;  %1588 = vmatprep.subr.bf16.mxu1 %v1703_v6  ;;  %v2127_v9 = vshrl.u32 %v641_v8, 7  ;;  %v1929_v56 = vmov 0   ;;  %vm705_vm1 = vcmask 7168   ;;  %vm1931_vm2 = vmmov 0   ;;  %s392_s24 = sand.u32 1, %s1911_s10   ;;  %s1560_s14 = sshll.u32 %s2004_s13, 9 }
  0x51   : > { %s2341_s21 = smov (!%p396_p10, %s1511_s21), 15  ;;  %1578 = vmatprep.subr.bf16.mxu0 %v1698_v1  ;;  %1589 = vmatpush3.bf16.msra.mxu1 %v1703_v6  ;;  %vm1005_vm3 = vcmask 1041409   ;;  %vm1007_vm4 = vcmask 1042434   ;;  %vm1009_vm5 = vcmask 1043459   ;;  %vm1011_vm6 = vcmask 1044484   ;;  %s2279_s16 = scalar_lea.hbm %s2331_s9, %s1560_s14 }
  0x52   : > { %s1512_s26 = sshll.u32 %s2341_s21, 2  ;;  %1590 = vmatprep.subr.bf16.mxu1 %v1704_v7  ;;  %v643_v10 = vsub.s32 0, %v2127_v9  ;;  %v657_v11 = vsub.s32 2, %v2127_v9  ;;  %v650_v12 = vsub.s32 1, %v2127_v9  ;;  %v664_v13 = vsub.s32 3, %v2127_v9  ;;  %1695 = vset.pattern.permute.xlu1 %v1929_v56  ;;  %s1932_s22 = smov [#allocation10]  }
  0x53   : > { %s399_s17 = scalar_lea.vmem %s2322_s0, %s1512_s26  ;;  %v671_v19 = vsub.s32 4, %v2127_v9  ;;  %v678_v20 = vsub.s32 5, %v2127_v9  ;;  %v685_v23 = vsub.s32 6, %v2127_v9  ;;  %v692_v24 = vsub.s32 7, %v2127_v9  ;;  %1696 = vset.pattern.permute.xlu0 %v1929_v56  ;;  %s1851_s29 = sshll.u32 %s1932_s22, 4  ;;  %s1852_s29 = int_to_ptr.vmem [resolvable:$false] %s1851_s29 }
  0x54   : > { %v2103_v2 = vld [vmem:[%s399_s17] sm:$0xff]   ;;  %v2105_v3 = vld [vmem:[%s399_s17 + $0x8] sm:$0xff]   ;;  %v2107_v4 = vld [vmem:[%s399_s17 + $0x10] sm:$0xff]   ;;  %1579 = vmatpush3.bf16.msra.mxu0 %v1698_v1  ;;  %s402_s27 = scalar_select %p401_p9, %s2004_s13, 1  ;;  %vm1013_vm7 = vcmask 1045509   ;;  %vm1015_vm8 = vcmask 1046534  }
  0x55   : > { %1580 = vmatprep.mubr.msk.bf16.mxu0 %vm457_vm0, %v2103_v2  ;;  %v2115_v5 = vld [vmem:[%s399_s17 + $0x18] sm:$0xff]   ;;  %1591 = vmatpush3.bf16.msra.mxu1 %v1704_v7  ;;  %vm1017_vm9 = vcmask 1047559   ;;  %vm1167_vm10 = vcmask 130048   ;;  %s1372_s13 = scalar_lea.sflag [#allocation4], %s392_s24  ;;  %s1853_s25 = scalar_lea.vmem %s1852_s29, 1024 }
  0x56   : > { %s1513_s23 = sshll.u32 %s402_s27, 3  ;;  %s1510_s27 = sshll.u32 %s392_s24, 5 }
  0x57   : > { %1581 = vmatmul.mubr.msk.bf16.vlgmr.msra.gmra.mxu0 %vm457_vm0, %v2105_v3  ;;  %s404_s26 = scalar_lea.vmem %s2323_s1, %s1513_s23  ;;  %s394_s23 = scalar_lea.vmem [#allocation10], %s1510_s27 }
  0x58   : > { %1584 = vmatprep.mubr.msk.bf16.mxu0 %vm457_vm0, %v2107_v4  ;;  %v640_v14 = vld [vmem:[%s404_s26] sm:$0xff]  ;;  %s1386_s21 = sshll.u32 %s394_s23, 4  ;;  %s2281_s21 = int_to_ptr.vmem [resolvable:$true] %s1386_s21 }
  0x59   : > { %v644_v15 = vrot.slane %v640_v14, %v643_v10  ;;  %v658_v16 = vrot.slane %v640_v14, %v657_v11  ;;  %v651_v17 = vrot.slane %v640_v14, %v650_v12  ;;  %v665_v18 = vrot.slane %v640_v14, %v664_v13  ;;  %s1847_s17 = scalar_lea.vmem %s2281_s21, 512  ;;  %p1854_p7 = scmp.lt.s32.totalorder %s2281_s21, %s1852_s29 }
  0x5a   : > { %v672_v21 = vrot.slane %v640_v14, %v671_v19  ;;  %v679_v22 = vrot.slane %v640_v14, %v678_v20  ;;  %v686_v25 = vrot.slane %v640_v14, %v685_v23  ;;  %v693_v26 = vrot.slane %v640_v14, %v692_v24  ;;  %p1848_p12 = scmp.ne.s32.totalorder %s2281_s21, %s1847_s17  ;;  %p1855_p8 = scmp.lt.s32.totalorder %s1853_s25, %s1847_s17 }
  0x5b   : > { %646 = vbcast.lane.b32.xlu0 %v644_v15, 256  ;;  %660 = vbcast.lane.b32.xlu1 %v658_v16, 256 }
  0x5c   : > { %p1849_p13 = pnand %p1848_p12, %p2021_p5  ;;  %p1856_p11 = por %p1855_p8, %p1854_p7 }
  0x5e   : > { %p1850_p4 = pneg %p1849_p13 }
  0x5f   : > { %1585 = vmatmul.mubr.msk.bf16.gmra.mxu0 %vm457_vm0, %v2115_v5  ;;  %653 = vbcast.lane.b32.xlu0 %v651_v17, 256 }
  0x60   : > { %667 = vbcast.lane.b32.xlu1 %v665_v18, 256  ;;  %p1857_p0 = pnand %p1856_p11, %p1850_p4 }
  0x63   : > { %674 = vbcast.lane.b32.xlu0 %v672_v21, 256 }
  0x64   : > { %681 = vbcast.lane.b32.xlu1 %v679_v22, 256 }
  0x67   : > { %688 = vbcast.lane.b32.xlu0 %v686_v25, 256 }
  0x68   : > { %695 = vbcast.lane.b32.xlu1 %v693_v26, 256 }
  0xcd   : > { %v647_v57 = vpop.permute.xlu0 %646  ;;  %v661_v58 = vpop.permute.xlu1 %660 }
  0xd1   : > { %v654_v59 = vpop.permute.xlu0 %653 }
  0xd2   : > { %v668_v60 = vpop.permute.xlu1 %667 }
  0xd5   : > { %v675_v62 = vpop.permute.xlu0 %674 }
  0xd6   : > { %v682_v14 = vpop.permute.xlu1 %681 }
  0xd9   : > { %v689_v22 = vpop.permute.xlu0 %688 }
 0x117   : > { %v1582_v27 = vpop.f32.mrf.mxu0 }
 0x118   : > { %v513_v33 = vadd.f32 %v1582_v27, %v1514_v29 }
 0x119   : > { %v504_v28 = vpop.f32.mrf.mxu0 }
 0x11a   : > { %v505_v31 = vadd.f32 %v1514_v29, %v504_v28  ;;  %v537_v40 = vmax.f32 %v513_v33, 0.0 }
 0x11b   : > { %v1583_v30 = vpop.f32.mrf.mxu0 }
 0x11c   : > { %v516_v32 = vadd.f32 %v1583_v30, %v1514_v29  ;;  %v535_v38 = vmax.f32 %v505_v31, 0.0 }
 0x11d   : > { %v507_v34 = vpop.f32.mrf.mxu0 }
 0x11e   : > { %v508_v35 = vadd.f32 %v1514_v29, %v507_v34  ;;  %v538_v36 = vmax.f32 %v516_v32, 0.0 }
 0x11f   : > { %v1586_v37 = vpop.f32.mrf.mxu0 }
 0x120   : > { %v536_v39 = vmax.f32 %v508_v35, 0.0  ;;  %v544_v43 = vpack.c.bf16 %v538_v36, %v537_v40  ;;  %v529_v47 = vadd.f32 %v1586_v37, %v1514_v29 }
 0x121   : > { %v520_v41 = vpop.f32.mrf.mxu0 }
 0x122   : > { %v543_v42 = vpack.c.bf16 %v536_v39, %v535_v38  ;;  %v521_v45 = vadd.f32 %v1514_v29, %v520_v41  ;;  %v541_v53 = vmax.f32 %v529_v47, 0.0  ;;  %v696_v38 = vpop.permute.xlu1 %695 }
 0x123   : > { %v1587_v44 = vpop.f32.mrf.mxu0 }
 0x124   : > { %v532_v46 = vadd.f32 %v1587_v44, %v1514_v29  ;;  %1592 = vmatprep.mubr.msk.bf16.mxu1 %vm457_vm0, %v543_v42  ;;  %v539_v51 = vmax.f32 %v521_v45, 0.0 }
 0x125   : > { %v523_v48 = vpop.f32.mrf.mxu0  ;;  %1593 = vmatmul.mubr.msk.bf16.vlgmr.msra.gmra.mxu1 %vm457_vm0, %v544_v43 }
 0x126   : > { %v524_v49 = vadd.f32 %v1514_v29, %v523_v48  ;;  %v542_v50 = vmax.f32 %v532_v46, 0.0 }
 0x128   : > { %v540_v52 = vmax.f32 %v524_v49, 0.0  ;;  %v546_v55 = vpack.c.bf16 %v542_v50, %v541_v53 }
 0x12a   : > { %v545_v54 = vpack.c.bf16 %v540_v52, %v539_v51 }
 0x12c   : > { %1596 = vmatprep.mubr.msk.bf16.mxu1 %vm457_vm0, %v545_v54 }
 0x12d   : > { %1597 = vmatmul.mubr.msk.bf16.gmra.mxu1 %vm457_vm0, %v546_v55 }
 0x12e   : > { %1203 = vmatprep.mubr.bf16.mxu1 %v1929_v56 }
 0x1e5   : > { %v1594_v61 = vpop.f32.mrf.mxu1 }
 0x1e6   : > { %v699_v63 = vsub.f32 %v1594_v61, %v661_v58 }
 0x1e7   : > { %v609_v0 = vpop.f32.mrf.mxu1 }
 0x1e8   : > { %v720_v1 = vsel %vm705_vm1, %v699_v63, -inf  ;;  %v697_v6 = vsub.f32 %v609_v0, %v647_v57 }
 0x1e9   : > { %v721_v7 = vrot.slane %v720_v1, 4  ;;  %v1595_v8 = vpop.f32.mrf.mxu1 }
 0x1ea   : > { %v706_v15 = vsel %vm705_vm1, %v697_v6, -inf  ;;  %v2165_v16 = vsub.f32 %v1595_v8, %v668_v60 }
 0x1eb   : > { %v722_v17 = vmax.f32 %v720_v1, %v721_v7  ;;  %v707_v18 = vrot.slane %v706_v15, 4  ;;  %v612_v21 = vpop.f32.mrf.mxu1 }
 0x1ec   : > { %v727_v25 = vsel %vm705_vm1, %v2165_v16, -inf  ;;  %v2169_v26 = vsub.f32 %v612_v21, %v654_v59 }
 0x1ed   : > { %v723_v27 = vrot.slane %v722_v17, 2  ;;  %v708_v28 = vmax.f32 %v706_v15, %v707_v18  ;;  %v728_v29 = vrot.slane %v727_v25, 4  ;;  %v1598_v30 = vpop.f32.mrf.mxu1 }
 0x1ee   : > { %v713_v31 = vsel %vm705_vm1, %v2169_v26, -inf  ;;  %v2173_v32 = vsub.f32 %v1598_v30, %v689_v22 }
 0x1ef   : > { %v724_v33 = vmax.f32 %v722_v17, %v723_v27  ;;  %v709_v34 = vrot.slane %v708_v28, 2  ;;  %v729_v35 = vmax.f32 %v727_v25, %v728_v29  ;;  %v714_v36 = vrot.slane %v713_v31, 4  ;;  %v625_v37 = vpop.f32.mrf.mxu1 }
 0x1f0   : > { %v748_v39 = vsel %vm705_vm1, %v2173_v32, -inf  ;;  %v701_v40 = vsub.f32 %v625_v37, %v675_v62 }
 0x1f1   : > { %v725_v41 = vrot.slane %v724_v33, 1  ;;  %v710_v42 = vmax.f32 %v708_v28, %v709_v34  ;;  %v730_v43 = vrot.slane %v729_v35, 2  ;;  %v715_v44 = vmax.f32 %v713_v31, %v714_v36  ;;  %v1599_v45 = vpop.f32.mrf.mxu1 }
 0x1f2   : > { %v749_v46 = vrot.slane %v748_v39, 4  ;;  %v734_v47 = vsel %vm705_vm1, %v701_v40, -inf  ;;  %v704_v48 = vsub.f32 %v1599_v45, %v696_v38 }
 0x1f3   : > { %v726_v49 = vmax.f32 %v724_v33, %v725_v41  ;;  %v711_v50 = vrot.slane %v710_v42, 1  ;;  %v731_v51 = vmax.f32 %v729_v35, %v730_v43  ;;  %v716_v52 = vrot.slane %v715_v44, 2  ;;  %v628_v53 = vpop.f32.mrf.mxu1 }
 0x1f4   : > { %v750_v54 = vmax.f32 %v748_v39, %v749_v46  ;;  %v735_v55 = vrot.slane %v734_v47, 4  ;;  %v755_v57 = vsel %vm705_vm1, %v704_v48, -inf  ;;  %v702_v58 = vsub.f32 %v628_v53, %v682_v14 }
 0x1f5   : > { %v764_v59 = vsub.f32 %v699_v63, %v726_v49  ;;  %v712_v60 = vmax.f32 %v710_v42, %v711_v50  ;;  %v732_v61 = vrot.slane %v731_v51, 1  ;;  %v717_v62 = vmax.f32 %v715_v44, %v716_v52 }
 0x1f6   : > { %v751_v0 = vrot.slane %v750_v54, 2  ;;  %v736_v1 = vmax.f32 %v734_v47, %v735_v55  ;;  %v756_v7 = vrot.slane %v755_v57, 4  ;;  %v741_v8 = vsel %vm705_vm1, %v702_v58, -inf }
 0x1f7   : > { %v774_v15 = vmul.f32 1.442695, %v764_v59  ;;  %v762_v17 = vsub.f32 %v697_v6, %v712_v60  ;;  %v733_v18 = vmax.f32 %v731_v51, %v732_v61  ;;  %v718_v21 = vrot.slane %v717_v62, 1 }
 0x1f8   : > { %v752_v22 = vmax.f32 %v750_v54, %v751_v0  ;;  %v737_v25 = vrot.slane %v736_v1, 2  ;;  %v757_v27 = vmax.f32 %v755_v57, %v756_v7  ;;  %v742_v28 = vrot.slane %v741_v8, 4 }
 0x1f9   : > { %1711 = vpow2.f32 %v774_v15  ;;  %v770_v29 = vmul.f32 1.442695, %v762_v17  ;;  %v765_v63 = vsub.f32 %v2165_v16, %v733_v18  ;;  %v719_v14 = vmax.f32 %v717_v62, %v718_v21 }
 0x1fa   : > { %v753_v30 = vrot.slane %v752_v22, 1  ;;  %v738_v31 = vmax.f32 %v736_v1, %v737_v25  ;;  %v758_v33 = vrot.slane %v757_v27, 2  ;;  %v743_v34 = vmax.f32 %v741_v8, %v742_v28 }
 0x1fb   : > { %1713 = vpow2.f32 %v770_v29  ;;  %v776_v35 = vmul.f32 1.442695, %v765_v63  ;;  %v763_v36 = vsub.f32 %v2169_v26, %v719_v14 }
 0x1fc   : > { %v754_v6 = vmax.f32 %v752_v22, %v753_v30  ;;  %v739_v37 = vrot.slane %v738_v31, 1  ;;  %v759_v38 = vmax.f32 %v757_v27, %v758_v33  ;;  %v744_v39 = vrot.slane %v743_v34, 2 }
 0x1fd   : > { %1715 = vpow2.f32 %v776_v35  ;;  %v772_v41 = vmul.f32 1.442695, %v763_v36 }
 0x1fe   : > { %v768_v42 = vsub.f32 %v2173_v32, %v754_v6  ;;  %v740_v43 = vmax.f32 %v738_v31, %v739_v37  ;;  %v760_v44 = vrot.slane %v759_v38, 1  ;;  %v745_v16 = vmax.f32 %v743_v34, %v744_v39 }
 0x1ff   : > { %1717 = vpow2.f32 %v772_v41 }
 0x200   : > { %v782_v45 = vmul.f32 1.442695, %v768_v42  ;;  %v766_v46 = vsub.f32 %v701_v40, %v740_v43  ;;  %v761_v47 = vmax.f32 %v759_v38, %v760_v44  ;;  %v746_v49 = vrot.slane %v745_v16, 1 }
 0x202   : > { %1719 = vpow2.f32 %v782_v45  ;;  %v778_v50 = vmul.f32 1.442695, %v766_v46  ;;  %v769_v51 = vsub.f32 %v704_v48, %v761_v47  ;;  %v747_v26 = vmax.f32 %v745_v16, %v746_v49 }
 0x204   : > { %1721 = vpow2.f32 %v778_v50  ;;  %v784_v52 = vmul.f32 1.442695, %v769_v51  ;;  %v767_v53 = vsub.f32 %v702_v58, %v747_v26 }
 0x206   : > { %v2183_v54 = vpop.eup %1711  ;;  %1723 = vpow2.f32 %v784_v52  ;;  %v780_v55 = vmul.f32 1.442695, %v767_v53 }
 0x207   : > { %v800_v32 = vsel %vm705_vm1, %v2183_v54, 0.0 }
 0x208   : > { %v2187_v57 = vpop.eup %1713  ;;  %v801_v59 = vrot.slane %v800_v32, 4  ;;  %1725 = vpow2.f32 %v780_v55 }
 0x209   : > { %v786_v40 = vsel %vm705_vm1, %v2187_v57, 0.0 }
 0x20a   : > { %v2191_v60 = vpop.eup %1715  ;;  %v802_v48 = vadd.f32 %v801_v59, %v800_v32  ;;  %v787_v61 = vrot.slane %v786_v40, 4 }
 0x20b   : > { %v807_v58 = vsel %vm705_vm1, %v2191_v60, 0.0 }
 0x20c   : > { %v2195_v62 = vpop.eup %1717  ;;  %v803_v0 = vrot.slane %v802_v48, 2  ;;  %v788_v1 = vadd.f32 %v787_v61, %v786_v40  ;;  %v808_v7 = vrot.slane %v807_v58, 4 }
 0x20d   : > { %v793_v8 = vsel %vm705_vm1, %v2195_v62, 0.0 }
 0x20e   : > { %v789_v15 = vrot.slane %v788_v1, 2  ;;  %v809_v17 = vadd.f32 %v808_v7, %v807_v58  ;;  %v794_v18 = vrot.slane %v793_v8, 4  ;;  %v804_v21 = vadd.f32 %v803_v0, %v802_v48 }
 0x20f   : > { %v2199_v22 = vpop.eup %1719 }
 0x210   : > { %v810_v25 = vrot.slane %v809_v17, 2  ;;  %v795_v27 = vadd.f32 %v794_v18, %v793_v8  ;;  %v828_v28 = vsel %vm705_vm1, %v2199_v22, 0.0  ;;  %v805_v29 = vrot.slane %v804_v21, 1 }
 0x211   : > { %v1722_v63 = vpop.eup %1721  ;;  %v829_v14 = vrot.slane %v828_v28, 4  ;;  %v790_v30 = vadd.f32 %v789_v15, %v788_v1 }
 0x212   : > { %v796_v31 = vrot.slane %v795_v27, 2  ;;  %v814_v33 = vsel %vm705_vm1, %v1722_v63, 0.0  ;;  %v806_v34 = vadd.f32 %v805_v29, %v804_v21  ;;  %v811_v35 = vadd.f32 %v810_v25, %v809_v17 }
 0x213   : > { %v2204_v36 = vpop.eup %1723  ;;  %v830_v6 = vadd.f32 %v829_v14, %v828_v28  ;;  %v815_v37 = vrot.slane %v814_v33, 4  ;;  %v791_v38 = vrot.slane %v790_v30, 1 }
 0x214   : > { %v835_v39 = vsel %vm705_vm1, %v2204_v36, 0.0  ;;  %1727 = vrcp.f32 %v806_v34  ;;  %v812_v41 = vrot.slane %v811_v35, 1  ;;  %v797_v42 = vadd.f32 %v796_v31, %v795_v27 }
 0x215   : > { %v1726_v43 = vpop.eup %1725  ;;  %v831_v44 = vrot.slane %v830_v6, 2  ;;  %v816_v16 = vadd.f32 %v815_v37, %v814_v33  ;;  %v836_v45 = vrot.slane %v835_v39, 4  ;;  %v792_v46 = vadd.f32 %v791_v38, %v790_v30 }
 0x216   : > { %v821_v47 = vsel %vm705_vm1, %v1726_v43, 0.0  ;;  %v813_v49 = vadd.f32 %v812_v41, %v811_v35  ;;  %v798_v50 = vrot.slane %v797_v42, 1  ;;  %v1081_v41 = vld [vmem:[#allocation7 + $0x20] sm:$0xff] }
 0x217   : > { %v817_v51 = vrot.slane %v816_v16, 2  ;;  %v837_v26 = vadd.f32 %v836_v45, %v835_v39  ;;  %v822_v52 = vrot.slane %v821_v47, 4  ;;  %1729 = vrcp.f32 %v792_v46 }
 0x218   : > { %v799_v53 = vadd.f32 %v798_v50, %v797_v42  ;;  %v832_v55 = vadd.f32 %v831_v44, %v830_v6  ;;  %1731 = vrcp.f32 %v813_v49  ;;  %v2221_v42 = vld [vmem:[#allocation7 + $0x8] sm:$0xff]  ;;  %v860_v46 = vunpack.c.l.bf16 %v2105_v3 }
 0x219   : > { %v838_v32 = vrot.slane %v837_v26, 2  ;;  %v823_v59 = vadd.f32 %v822_v52, %v821_v47  ;;  %v818_v40 = vadd.f32 %v817_v51, %v816_v16  ;;  %v2223_v44 = vld [vmem:[#allocation7 + $0x28] sm:$0xff]  ;;  %v858_v49 = vunpack.c.l.bf16 %v2103_v2 }
 0x21a   : > { %1733 = vrcp.f32 %v799_v53  ;;  %v833_v48 = vrot.slane %v832_v55, 1  ;;  %v1537_v16 = vcombine.low %v2221_v42, %v2223_v44  ;;  %v1538_v45 = vcombine.high %v2221_v42, %v2223_v44 }
 0x21b   : > { %v824_v61 = vrot.slane %v823_v59, 2  ;;  %v819_v58 = vrot.slane %v818_v40, 1  ;;  %v839_v0 = vadd.f32 %v838_v32, %v837_v26  ;;  %v859_v52 = vunpack.c.h.bf16 %v2103_v2 }
 0x21c   : > { %v834_v7 = vadd.f32 %v833_v48, %v832_v55  ;;  %v861_v32 = vunpack.c.h.bf16 %v2105_v3 }
 0x21d   : > { %v820_v1 = vadd.f32 %v819_v58, %v818_v40  ;;  %v825_v8 = vadd.f32 %v824_v61, %v823_v59  ;;  %v840_v15 = vrot.slane %v839_v0, 1 }
 0x21f   : > { %1735 = vrcp.f32 %v820_v1  ;;  %v826_v17 = vrot.slane %v825_v8, 1  ;;  %v841_v25 = vadd.f32 %v840_v15, %v839_v0 }
 0x220   : > { %1737 = vrcp.f32 %v834_v7 }
 0x221   : > { %v1728_v18 = vpop.eup %1727  ;;  %v827_v21 = vadd.f32 %v826_v17, %v825_v8  ;;  %v862_v8 = vunpack.c.l.bf16 %v2107_v4 }
 0x222   : > { %v847_v27 = vmul.f32 %v1728_v18, %v2183_v54 }
 0x223   : > { %1739 = vrcp.f32 %v827_v21 }
 0x224   : > { %v1730_v28 = vpop.eup %1729  ;;  %878 = vperm.xlu1 %1695, %v847_v27   ;;  %1741 = vrcp.f32 %v841_v25 }
 0x225   : > { %v843_v29 = vmul.f32 %v1730_v28, %v2187_v57  ;;  %v1732_v14 = vpop.eup %1731 }
 0x226   : > { %v849_v33 = vmul.f32 %v1732_v14, %v2191_v60  ;;  %v1705_v60 = vld [vmem:[%s2327_s5 + $0x8] sm:$0xff]   ;;  %v864_v14 = vunpack.c.l.bf16 %v2115_v5 }
 0x227   : > { %v1734_v30 = vpop.eup %1733  ;;  %868 = vperm.xlu0 %1696, %v843_v29  }
 0x228   : > { %v845_v31 = vmul.f32 %v1734_v30, %v2195_v62  ;;  %v1930_v62 = vmov 0.0   ;;  %v863_v30 = vunpack.c.h.bf16 %v2107_v4 }
 0x229   : > { %1600 = vmatprep.subr.bf16.mxu0 %v1930_v62  ;;  %1604 = vmatprep.mubr.msk.bf16.mxu0 %vm1931_vm2, %v1930_v62 }
 0x22a   : > { %873 = vperm.xlu1 %1695, %v845_v31   ;;  %1601 = vmatpush3.bf16.msra.mxu0 %v1705_v60 }
 0x22b   : > { %883 = vperm.xlu0 %1696, %v849_v33   ;;  %1602 = vmatprep.subr.bf16.mxu0 %v1930_v62 }
 0x22c   : > { %v1736_v34 = vpop.eup %1735 }
 0x22d   : > { %v851_v35 = vmul.f32 %v1736_v34, %v1722_v63  ;;  %v1738_v6 = vpop.eup %1737  ;;  %v1706_v63 = vld [vmem:[%s2327_s5] sm:$0xff]  }
 0x22e   : > { %v855_v37 = vmul.f32 %v1738_v6, %v2199_v22  ;;  %1603 = vmatpush3.bf16.msra.mxu0 %v1706_v63  ;;  %v1077_v22 = vld [vmem:[#allocation7] sm:$0xff] }
 0x22f   : > { %888 = vperm.xlu1 %1695, %v851_v35   ;;  %1226 = vmatprep.subr.bf16.mxu0 %v1538_v45 }
 0x230   : > { %v1740_v54 = vpop.eup %1739 }
 0x231   : > { %v853_v38 = vmul.f32 %v1740_v54, %v1726_v43  ;;  %v1742_v39 = vpop.eup %1741  ;;  %v1536_v43 = vcombine.high %v1077_v22, %v1081_v41 }
 0x232   : > { %v857_v57 = vmul.f32 %v1742_v39, %v2204_v36  ;;  %v1535_v36 = vcombine.low %v1077_v22, %v1081_v41  ;;  %v865_v22 = vunpack.c.h.bf16 %v2115_v5 }
 0x233   : > { %898 = vperm.xlu1 %1695, %v855_v37   ;;  %893 = vperm.xlu0 %1696, %v853_v38  }
 0x234   : > { %1185 = vmatprep.subr.bf16.mxu1 %v1536_v43 }
 0x235   : > { %1186 = vmatpush1.bf16.msra.mxu1 %v1535_v36 }
 0x237   : > { %903 = vperm.xlu0 %1696, %v857_v57  }
 0x29f   : > { %v879_v47 = vpop.permute.xlu1 %878 }
 0x2a0   : > { %v908_v50 = vmul.f32 %v879_v47, %v860_v46 }
 0x2a2   : > { %v928_v51 = vsel %vm457_vm0, %v908_v50, 0.0  ;;  %v869_v26 = vpop.permute.xlu0 %868 }
 0x2a3   : > { %v929_v53 = vrot.slane %v928_v51, 4  ;;  %v906_v55 = vmul.f32 %v869_v26, %v858_v49 }
 0x2a5   : > { %v930_v59 = vadd.f32 %v929_v53, %v928_v51  ;;  %v914_v40 = vsel %vm457_vm0, %v906_v55, 0.0  ;;  %v874_v48 = vpop.permute.xlu1 %873 }
 0x2a6   : > { %v915_v61 = vrot.slane %v914_v40, 4  ;;  %v884_v58 = vpop.permute.xlu0 %883  ;;  %v907_v0 = vmul.f32 %v874_v48, %v859_v52 }
 0x2a7   : > { %v931_v1 = vrot.slane %v930_v59, 2  ;;  %v909_v7 = vmul.f32 %v884_v58, %v861_v32 }
 0x2a8   : > { %v916_v15 = vadd.f32 %v915_v61, %v914_v40  ;;  %v921_v17 = vsel %vm457_vm0, %v907_v0, 0.0 }
 0x2a9   : > { %v935_v2 = vsel %vm457_vm0, %v909_v7, 0.0  ;;  %v922_v18 = vrot.slane %v921_v17, 4  ;;  %v932_v21 = vadd.f32 %v931_v1, %v930_v59 }
 0x2aa   : > { %v917_v25 = vrot.slane %v916_v15, 2  ;;  %v936_v3 = vrot.slane %v935_v2, 4  ;;  %v889_v27 = vpop.permute.xlu1 %888 }
 0x2ab   : > { %v923_v28 = vadd.f32 %v922_v18, %v921_v17  ;;  %v910_v29 = vmul.f32 %v889_v27, %v862_v8  ;;  %v933_v6 = vrot.slane %v932_v21, 1 }
 0x2ac   : > { %v918_v31 = vadd.f32 %v917_v25, %v916_v15  ;;  %v937_v33 = vadd.f32 %v936_v3, %v935_v2 }
 0x2ad   : > { %v924_v34 = vrot.slane %v923_v28, 2  ;;  %v942_v35 = vsel %vm457_vm0, %v910_v29, 0.0  ;;  %v934_v47 = vadd.f32 %v933_v6, %v932_v21 }
 0x2ae   : > { %v919_v54 = vrot.slane %v918_v31, 1  ;;  %v938_v37 = vrot.slane %v937_v33, 2  ;;  %v943_v38 = vrot.slane %v942_v35, 4  ;;  %v899_v39 = vpop.permute.xlu1 %898  ;;  %v894_v57 = vpop.permute.xlu0 %893 }
 0x2af   : > { %v925_v60 = vadd.f32 %v924_v34, %v923_v28  ;;  %v912_v62 = vmul.f32 %v899_v39, %v864_v14  ;;  %v911_v63 = vmul.f32 %v894_v57, %v863_v30  ;;  %v972_v0 = vpack.c.bf16 %v934_v47, %v934_v47 }
 0x2b0   : > { %v920_v41 = vadd.f32 %v919_v54, %v918_v31  ;;  %v939_v36 = vadd.f32 %v938_v37, %v937_v33  ;;  %v944_v43 = vadd.f32 %v943_v38, %v942_v35 }
 0x2b1   : > { %v926_v4 = vrot.slane %v925_v60, 1  ;;  %v956_v45 = vsel %vm457_vm0, %v912_v62, 0.0  ;;  %v949_v46 = vsel %vm457_vm0, %v911_v63, 0.0  ;;  %v999_v29 = vunpack.c.l.b16 %v972_v0  ;;  %v1085_v0 = vld [vmem:[#allocation8] sm:$0xff] }
 0x2b2   : > { %v940_v49 = vrot.slane %v939_v36, 1  ;;  %v945_v50 = vrot.slane %v944_v43, 2  ;;  %v957_v51 = vrot.slane %v956_v45, 4  ;;  %v904_v26 = vpop.permute.xlu0 %903  ;;  %v970_v52 = vpack.c.bf16 %v920_v41, %v920_v41 }
 0x2b3   : > { %v927_v53 = vadd.f32 %v926_v4, %v925_v60  ;;  %v950_v55 = vrot.slane %v949_v46, 4  ;;  %v913_v32 = vmul.f32 %v904_v26, %v865_v22  ;;  %v1080_v26 = vld [vmem:[#allocation7 + $0x18] sm:$0xff] }
 0x2b4   : > { %v946_v59 = vadd.f32 %v945_v50, %v944_v43  ;;  %v958_v5 = vadd.f32 %v957_v51, %v956_v45  ;;  %v941_v40 = vadd.f32 %v940_v49, %v939_v36  ;;  %v997_v15 = vunpack.c.l.b16 %v970_v52  ;;  %v1079_v50 = vld [vmem:[#allocation7 + $0x10] sm:$0xff] }
 0x2b5   : > { %v971_v48 = vpack.c.bf16 %v927_v53, %v927_v53  ;;  %v951_v61 = vadd.f32 %v950_v55, %v949_v46  ;;  %v963_v58 = vsel %vm457_vm0, %v913_v32, 0.0  ;;  %v1083_v51 = vld [vmem:[#allocation7 + $0x30] sm:$0xff]  ;;  %v1084_v55 = vld [vmem:[#allocation7 + $0x38] sm:$0xff] }
 0x2b6   : > { %v947_v1 = vrot.slane %v946_v59, 1  ;;  %v959_v7 = vrot.slane %v958_v5, 2  ;;  %v964_v8 = vrot.slane %v963_v58, 4  ;;  %v973_v3 = vpack.c.bf16 %v941_v40, %v941_v40 }
 0x2b7   : > { %v998_v17 = vunpack.c.l.b16 %v971_v48  ;;  %v952_v2 = vrot.slane %v951_v61, 2  ;;  %v1539_v52 = vcombine.low %v1079_v50, %v1083_v51  ;;  %v1540_v53 = vcombine.high %v1079_v50, %v1083_v51 }
 0x2b8   : > { %v948_v18 = vadd.f32 %v947_v1, %v946_v59  ;;  %v960_v21 = vadd.f32 %v959_v7, %v958_v5  ;;  %v965_v25 = vadd.f32 %v964_v8, %v963_v58  ;;  %v1000_v54 = vunpack.c.l.b16 %v973_v3  ;;  %v1531_v5 = vld [vmem:[%s2328_s6] ss:$0 sm:$0xff] }
 0x2b9   : > { %v1006_v27 = vsel %vm1005_vm3, %v998_v17, %v997_v15  ;;  %v953_v28 = vadd.f32 %v952_v2, %v951_v61  ;;  %v1541_v32 = vcombine.low %v1080_v26, %v1084_v55  ;;  %v1542_v59 = vcombine.high %v1080_v26, %v1084_v55  ;;  %1267 = vmatprep.subr.bf16.mxu1 %v1540_v53 }
 0x2ba   : > { %v974_v14 = vpack.c.bf16 %v948_v18, %v948_v18  ;;  %v961_v30 = vrot.slane %v960_v21, 1  ;;  %v966_v31 = vrot.slane %v965_v25, 2  ;;  %v1008_v34 = vsel %vm1007_vm4, %v999_v29, %v1006_v27 }
 0x2bb   : > { %v954_v33 = vrot.slane %v953_v28, 1  ;;  %v1010_v60 = vsel %vm1009_vm5, %v1000_v54, %v1008_v34  ;;  %v1090_v1 = vrot.slane %v1085_v0, %v643_v10  ;;  %v1098_v7 = vrot.slane %v1085_v0, %v657_v11 }
 0x2bc   : > { %v962_v35 = vadd.f32 %v961_v30, %v960_v21  ;;  %v967_v6 = vadd.f32 %v966_v31, %v965_v25  ;;  %v1001_v38 = vunpack.c.l.b16 %v974_v14  ;;  %v1094_v8 = vrot.slane %v1085_v0, %v650_v12 }
 0x2bd   : > { %v955_v37 = vadd.f32 %v954_v33, %v953_v28  ;;  %v1102_v15 = vrot.slane %v1085_v0, %v664_v13  ;;  %v1106_v13 = vrot.slane %v1085_v0, %v671_v19  ;;  %v1114_v30 = vrot.slane %v1085_v0, %v685_v23 }
 0x2be   : > { %v976_v39 = vpack.c.bf16 %v962_v35, %v962_v35  ;;  %v968_v57 = vrot.slane %v967_v6, 1  ;;  %v1012_v36 = vsel %vm1011_vm6, %v1001_v38, %v1010_v60  ;;  %v1110_v31 = vrot.slane %v1085_v0, %v678_v20 }
 0x2bf   : > { %v975_v62 = vpack.c.bf16 %v955_v37, %v955_v37  ;;  %v1118_v33 = vrot.slane %v1085_v0, %v692_v24 }
 0x2c0   : > { %v969_v63 = vadd.f32 %v968_v57, %v967_v6  ;;  %v1003_v22 = vunpack.c.l.b16 %v976_v39 }
 0x2c1   : > { %v1002_v41 = vunpack.c.l.b16 %v975_v62 }
 0x2c2   : > { %v977_v43 = vpack.c.bf16 %v969_v63, %v969_v63 }
 0x2c3   : > { %v1014_v4 = vsel %vm1013_vm7, %v1002_v41, %v1012_v36 }
 0x2c4   : > { %v1004_v45 = vunpack.c.l.b16 %v977_v43  ;;  %v1016_v46 = vsel %vm1015_vm8, %v1003_v22, %v1014_v4 }
 0x2c6   : > { %v1018_v47 = vsel %vm1017_vm9, %v1004_v45, %v1016_v46 }
 0x2c7   : > { %v1019_v49 = vpack.c.b16 %v1018_v47, %v1018_v47 }
 0x2c9   : > { %1605 = vmatmul.mubr.msk.bf16.vlgmr.msra.gmra.mxu0 %vm457_vm0, %v1019_v49 }
 0x2ca   : > { %1227 = vmatpush1.bf16.msra.mxu0 %v1537_v16  ;;  %1244 = vmatprep.mubr.bf16.mxu0 %v1929_v56 }
 0x2cb   : > { %1308 = vmatprep.subr.bf16.mxu0 %v1542_v59 }
 0x389   : > { %v1069_v40 = vpop.f32.mrf.mxu0 }
 0x38a   : > { %v1070_v48 = vadd.f32 %v1531_v5, %v1069_v40 }
 0x38b   : > { %v1606_v42 = vpop.f32.mrf.mxu0 }
 0x38c   : > { %v1075_v44 = vmax.f32 %v1070_v48, 0.0 }
 0x38d   : > { %v1072_v16 = vpop.f32.mrf.mxu0 }
 0x38e   : > { %v1076_v61 = vpack.c.bf16 %v1075_v44, %v1075_v44 }
 0x38f   : > { %v1607_v58 = vpop.f32.mrf.mxu0 }
 0x390   : > { %1543 = vmatmul.mubr.msk.bf16.vlgmr.msra.gmra.mxu1 %vm1167_vm10, %v1076_v61  ;;  %1544 = vmatmul.mubr.msk.bf16.vlgmr.msra.gmra.mxu0 %vm1167_vm10, %v1076_v61 }
 0x391   : > { %1268 = vmatpush1.bf16.msra.mxu1 %v1539_v52  ;;  %1309 = vmatpush1.bf16.msra.mxu0 %v1541_v32 }
 0x392   : > { %1285 = vmatprep.mubr.bf16.mxu1 %v1929_v56  ;;  %1326 = vmatprep.mubr.bf16.mxu0 %v1929_v56 }
 0x398   : > { %1545 = vmatmul.mubr.msk.bf16.vlgmr.msra.gmra.mxu1 %vm1167_vm10, %v1076_v61  ;;  %1546 = vmatmul.mubr.msk.bf16.vlgmr.msra.gmra.mxu0 %vm1167_vm10, %v1076_v61 }
 0x450   : > { %v1205_v17 = vpop.f32.mrf.mxu1  ;;  %v1246_v2 = vpop.f32.mrf.mxu0 }
 0x451   : > { %v1206_v21 = vadd.f32 %v1205_v17, %v1090_v1  ;;  %v1247_v25 = vadd.f32 %v1246_v2, %v1098_v7 }
 0x452   : > { %v1207_v56 = vpop.f32.mrf.mxu1  ;;  %v1248_v18 = vpop.f32.mrf.mxu0 }
 0x453   : > { %v1208_v3 = vadd.f32 %v1207_v56, %v1094_v8  ;;  %v1249_v27 = vadd.f32 %v1248_v18, %v1102_v15 }
 0x454   : > { %v1209_v10 = vpop.f32.mrf.mxu1  ;;  %v1250_v28 = vpop.f32.mrf.mxu0 }
 0x455   : > { %v1556_v11 = vpack.c.bf16 %v1208_v3, %v1206_v21  ;;  %v1557_v29 = vpack.c.bf16 %v1249_v27, %v1247_v25 }
 0x456   : > { %v1210_v14 = vpop.f32.mrf.mxu1  ;;  %v1251_v12 = vpop.f32.mrf.mxu0 }
 0x457   : > { %1367 = vst [vmem:[%s394_s23] sm:$0xff] %v1556_v11  ;;  %1368 = vst [vmem:[%s394_s23 + $0x8] sm:$0xff] %v1557_v29 }
 0x458   : > { %v1287_v34 = vpop.f32.mrf.mxu1  ;;  %v1328_v35 = vpop.f32.mrf.mxu0 }
 0x459   : > { %v1288_v37 = vadd.f32 %v1287_v34, %v1106_v13  ;;  %v1329_v38 = vadd.f32 %v1328_v35, %v1114_v30 }
 0x45a   : > { %v1289_v6 = vpop.f32.mrf.mxu1  ;;  %v1330_v54 = vpop.f32.mrf.mxu0 }
 0x45b   : > { %v1290_v19 = vadd.f32 %v1289_v6, %v1110_v31  ;;  %v1331_v39 = vadd.f32 %v1330_v54, %v1118_v33 }
 0x45c   : > { %v1291_v57 = vpop.f32.mrf.mxu1  ;;  %v1332_v23 = vpop.f32.mrf.mxu0 }
 0x45d   : > { %v1558_v60 = vpack.c.bf16 %v1290_v19, %v1288_v37  ;;  %v1559_v62 = vpack.c.bf16 %v1331_v39, %v1329_v38 }
 0x45e   : > { %v1292_v9 = vpop.f32.mrf.mxu1  ;;  %v1333_v20 = vpop.f32.mrf.mxu0 }
 0x45f   : > { %1369 = vst [vmem:[%s394_s23 + $0x10] sm:$0xff] %v1558_v60  ;;  %1370 = vst [vmem:[%s394_s23 + $0x18] sm:$0xff] %v1559_v62 }
 0x460   : > { %1860 = shalt.err (!%p1857_p0)
}
 0x461   : > { %s1861_s27 = scalar_lea.hbm %s2279_s16, 512  ;;  %s1865_s14 = scalar_lea.hbm %s2331_s9, 1024 }
 0x462   : > { %p1862_p3 = scmp.ne.s32.totalorder %s2279_s16, %s1861_s27  ;;  %p1866_p10 = scmp.lt.s32.totalorder %s2279_s16, %s2331_s9 }
 0x463   : > { %p1867_p9 = scmp.lt.s32.totalorder %s1865_s14, %s1861_s27 }
 0x464   : > { %p1863_p1 = pnand %p1862_p3, %p2021_p5 }
 0x465   : > { %p1868_p12 = por %p1867_p9, %p1866_p10 }
 0x466   : > { %p1864_p2 = pneg %p1863_p1 }
 0x468   : > { %p1869_p13 = pnand %p1868_p12, %p1864_p2 }
 0x46a   : > { %1872 = shalt.err (!%p1869_p13)
}
 0x46b   : > { %1624 = dma.vmem_to_hbm [thread:$0]  (%p2021_p5), %s2281_s21, 512, %s2279_s16, %s1372_s13  }
 0x46c PF: > { %p1651_p4 = scmp.ge.s32.totalorder %s1919_s12, 2  ;;  %s1398_s17 = sand.u32 1, %s1907_s30  }
 0x46d   : > { %s1399_s22 = scalar_lea.sflag [#allocation4], %s1398_s17 }
 0x46e   : > { %p1640_p7 = pnand %p1651_p4, %p2025_p6 }
 0x470   : > { %p1641_p8 = pneg %p1640_p7 }
 0x472   : > { %1902 = dma.done.wait (%p1641_p8), %s1399_s22, 512  }
 0x473   : > { %1904 = vsyncadd (%p1641_p8), %s1399_s22, 4294966784  ;;  %p22_p11 = scmp.ge.s32.totalorder %s2008_s15, 4   ;;  %s2336_s30 = smov %s1911_s10 }
 0x474   : > { %s2337_s10 = smov %s1915_s11  ;;  %s2338_s11 = smov %s2019_s18 }
 0x475   : > { %s2339_s12 = smov %s2008_s15  ;;  %24 = sbr.rel (!%p22_p11) target bundleno = 6 (0x6), region = 111 }
 0x47a   :  { %1404 = vsyncpa [#allocation3], 1 }
 0x47b   :  { %1406 = vsyncpa [#allocation3 + $0x1], 1 }
 0x47c   :  { %1407 = vsyncpa [#allocation6], 1 }
 0x47d   :  { %1408 = vsyncpa [#allocation9], 1 }
 0x47e   :  { %1409 = vsyncpa [#allocation4], 1 }
 0x47f   :  { %1411 = vsyncpa [#allocation4 + $0x1], 1 }

</bundles_post_ra>
